<compile_context>
chip_gen: v7x
topology: tpu7x:2x2x1
jax: 0.10.0
libtpu: 0.0.40
codegen_flags: <defaults>
</compile_context>

<pallas_src>
import numpy as np
import jax
import jax.numpy as jnp
from jax import lax
from jax.experimental import pallas as pl
from jax.experimental.pallas import tpu as pltpu


# ----------------------------------------------------------------------------
# Fused kernel: RGCN (all timesteps, one matmul) -> LSTM (batch=1) -> VAE head.
# ----------------------------------------------------------------------------
def fused_rgcn_lstm_vae_kernel(
        x_ref,      # (T, N*F)     node features, flattened per timestep
        bigw_ref,   # (N*F, N*C)   fused RGCN operator (relations + root)
        gbias_ref,  # (1, N*C)     RGCN bias tiled over nodes
        wih_ref,    # (N*C, 4H)    LSTM W_ih^T
        whh_ref,    # (H, 4H)      LSTM W_hh^T
        lb_ref,     # (1, 4H)      LSTM bias (b_ih + b_hh)
        w1_ref,     # (H, P1)      VAE fc1 weight, lane-padded (cols >= 2L are 0)
        b1_ref,     # (1, P1)      VAE fc1 bias, lane-padded
        w2_ref,     # (L, P2)      VAE fc2 weight, lane-padded (cols >= N*F are 0)
        b2_ref,     # (1, P2)      VAE fc2 bias, lane-padded
        eps_ref,    # (T, L)       reparameterization noise
        recon_ref,  # out (T, P2)  sigmoid(fc2(z)), lane-dense
        mulv_ref,   # out (T, P1)  relu(fc1(lstm_out)) = [mu | log_var | 0...]
):
    T = x_ref.shape[0]
    H = whh_ref.shape[0]
    L = eps_ref.shape[1]

    # ----- RGCN, all timesteps / relations / root + relayout: ONE matmul ----
    lstm_in = jnp.dot(x_ref[...], bigw_ref[...],
                      preferred_element_type=jnp.float32) + gbias_ref[...]  # (T, N*C)

    # ----- LSTM encoder (batch = 1) ------------------------------------------
    # Input projection hoisted out of the recurrence.
    gates_x = jnp.dot(lstm_in, wih_ref[...],
                      preferred_element_type=jnp.float32) + lb_ref[...]     # (T, 4H)
    whh = whh_ref[...]
    h_t = jnp.zeros((1, H), dtype=jnp.float32)   # carried in vregs
    c_t = jnp.zeros((1, H), dtype=jnp.float32)
    hs = []
    for t in range(T):                           # serial recurrence (unrolled, T small)
        g = gates_x[t:t + 1, :] + jnp.dot(h_t, whh,
                                          preferred_element_type=jnp.float32)
        sig = jax.nn.sigmoid(g)                  # one EUP pass over the whole (1, 4H) row
        tg = jnp.tanh(g[:, 2 * H:3 * H])         # g-gate tanh
        i_g = sig[:, 0:H]                        # PyTorch gate order: i, f, g, o
        f_g = sig[:, H:2 * H]
        o_g = sig[:, 3 * H:4 * H]
        c_t = f_g * c_t + i_g * tg
        h_t = o_g * jnp.tanh(c_t)
        hs.append(h_t)
    lstm_out = jnp.concatenate(hs, axis=0)       # (T, H), stays in vregs

    # ----- VAE head, batched over T ------------------------------------------
    # w1/b1 padded columns are zero -> hz[:, 2L:] == relu(0) == 0, so the
    # (T, P1) store below is lane-dense and unpacking is a wrapper slice.
    hz = jnp.maximum(
        jnp.dot(lstm_out, w1_ref[...], preferred_element_type=jnp.float32)
        + b1_ref[...], 0.0)                                                  # (T, P1)
    mu = hz[:, 0:L]                              # torch.chunk(h, 2, dim=1)
    log_var = hz[:, L:2 * L]
    z = mu + eps_ref[...] * jnp.exp(0.5 * log_var)                           # (T, L)
    recon_ref[...] = jax.nn.sigmoid(
        jnp.dot(z, w2_ref[...], preferred_element_type=jnp.float32) + b2_ref[...])
    mulv_ref[...] = hz


# ----------------------------------------------------------------------------
# Host-side graph / parameter preparation (one-time setup).
# ----------------------------------------------------------------------------
def build_normalized_adjacency(edge_index, edge_type, num_nodes, num_relations):
    """Dense mean-normalized adjacency matching PyG RGCNConv(aggr='mean'):
    adj[r, dst, src] = 1 / deg_r(dst) for every edge (src -> dst) of relation r."""
    adj = np.zeros((num_relations, num_nodes, num_nodes), dtype=np.float32)
    src, dst = np.asarray(edge_index)
    et = np.asarray(edge_type)
    for e in range(src.shape[0]):
        adj[et[e], dst[e], src[e]] += 1.0
    deg = adj.sum(axis=-1, keepdims=True)
    adj = np.where(deg > 0, adj / np.maximum(deg, 1.0), 0.0).astype(np.float32)
    return jnp.asarray(adj)


def init_params(key, rgcn_in, rgcn_out, num_nodes, lstm_hidden, latent,
                num_features_per_node, num_relations=2):
    # NOTE: uniform(+-1/sqrt(fan_in)) init; PyG's RGCNConv uses Glorot by
    # default, so values won't match torch for the same seed (structure does).
    def uni(k, shape, scale):
        return jax.random.uniform(k, shape, jnp.float32, -scale, scale)

    ks = jax.random.split(key, 10)
    D = rgcn_out * num_nodes
    H = lstm_hidden
    NF = num_nodes * num_features_per_node
    return {
        # RGCN (per-relation weights, root weight, bias)
        "w_rel": uni(ks[0], (num_relations, rgcn_in, rgcn_out),
                     1.0 / np.sqrt(rgcn_in)),
        "w_root": uni(ks[1], (rgcn_in, rgcn_out), 1.0 / np.sqrt(rgcn_in)),
        "rgcn_bias": uni(ks[2], (1, rgcn_out), 1.0 / np.sqrt(rgcn_in)),
        # LSTM (input D -> hidden H), stored transposed as (in, 4H)
        "wih": uni(ks[3], (D, 4 * H), 1.0 / np.sqrt(H)),
        "whh": uni(ks[4], (H, 4 * H), 1.0 / np.sqrt(H)),
        "lstm_b": uni(ks[5], (1, 4 * H), 1.0 / np.sqrt(H)),
        # VAE fc1: H -> 2*latent ; fc2: latent -> N*F
        "w1": uni(ks[6], (H, 2 * latent), 1.0 / np.sqrt(H)),
        "b1": uni(ks[7], (1, 2 * latent), 1.0 / np.sqrt(H)),
        "w2": uni(ks[8], (latent, NF), 1.0 / np.sqrt(latent)),
        "b2": uni(ks[9], (1, NF), 1.0 / np.sqrt(latent)),
    }


def _pad_lanes(a, width):
    out = jnp.zeros((a.shape[0], width), jnp.float32)
    return out.at[:, :a.shape[1]].set(a)


def pack_params(params, adj, num_nodes):
    """One-time packing of logical params into the fused-kernel operand set.

    BigW[m*F+f, n*C+c] = sum_k ops[k, n, m] * W_k[f, c] with
    ops = [adj_0 .. adj_{R-1}, I_N] and W_k = [W_rel_0 .. W_rel_{R-1}, W_root],
    so that x.reshape(T, N*F) @ BigW equals the RGCN output already laid out as
    the (T, N*C) LSTM input (relations, root term and relayout all fused)."""
    N = num_nodes
    R, Fd, C = params["w_rel"].shape
    ops = jnp.concatenate([adj, jnp.eye(N, dtype=jnp.float32)[None]], axis=0)
    w_all = jnp.concatenate([params["w_rel"], params["w_root"][None]], axis=0)
    bigw = jnp.einsum('knm,kfc->mfnc', ops, w_all).reshape(N * Fd, N * C)
    gbias = jnp.tile(params["rgcn_bias"], (1, N))                 # (1, N*C)

    L2 = params["w1"].shape[1]                                    # 2 * latent
    NF = params["w2"].shape[1]                                    # N * F
    p1 = max(128, int(np.ceil(L2 / 128.0)) * 128)                 # lane-dense outs
    p2 = max(128, int(np.ceil(NF / 128.0)) * 128)
    return {
        "bigw": bigw,
        "gbias": gbias,
        "wih": params["wih"],
        "whh": params["whh"],
        "lstm_b": params["lstm_b"],
        "w1_pad": _pad_lanes(params["w1"], p1),
        "b1_pad": _pad_lanes(params["b1"], p1),
        "w2_pad": _pad_lanes(params["w2"], p2),
        "b2_pad": _pad_lanes(params["b2"], p2),
    }


# ----------------------------------------------------------------------------
# Wrapper: single gridless pallas_call (whole problem fits VMEM many times
# over on v5e/v6e/v7x, so BlockSpec tiling would only add per-step overhead).
# ----------------------------------------------------------------------------
def rgcn_lstm_vae_forward(x, packed, eps):
    T, N, Fd = x.shape
    L2 = 2 * eps.shape[1]
    L = eps.shape[1]
    NF = N * Fd
    p1 = packed["w1_pad"].shape[1]
    p2 = packed["w2_pad"].shape[1]

    x_flat = x.reshape(T, N * Fd)

    recon_pad, mulv_pad = pl.pallas_call(
        fused_rgcn_lstm_vae_kernel,
        out_shape=(jax.ShapeDtypeStruct((T, p2), jnp.float32),
                   jax.ShapeDtypeStruct((T, p1), jnp.float32)),
    )(x_flat, packed["bigw"], packed["gbias"],
      packed["wih"], packed["whh"], packed["lstm_b"],
      packed["w1_pad"], packed["b1_pad"], packed["w2_pad"], packed["b2_pad"],
      eps)

    mu = mulv_pad[:, :L]
    log_var = mulv_pad[:, L:L2]
    vae_out = recon_pad[:, :NF].reshape(T, N, Fd)
    return vae_out, mu, log_var


# ----------------------------------------------------------------------------
# Plain-JAX reference (same math, straightforward formulation) for validation.
# ----------------------------------------------------------------------------
def reference_forward(x, adj, params, eps):
    T, N, Fd = x.shape
    C = params["w_root"].shape[1]
    H = params["whh"].shape[0]
    L = params["w2"].shape[0]

    msg = jnp.einsum('rnm,tmf,rfc->tnc', adj, x, params["w_rel"])
    root = jnp.einsum('tnf,fc->tnc', x, params["w_root"])
    rgcn_out = msg + root + params["rgcn_bias"][0]
    lstm_in = rgcn_out.reshape(T, N * C)

    def step(carry, xt):
        h, c = carry
        g = xt @ params["wih"] + h @ params["whh"] + params["lstm_b"][0]
        i = jax.nn.sigmoid(g[0:H])
        f = jax.nn.sigmoid(g[H:2 * H])
        gg = jnp.tanh(g[2 * H:3 * H])
        o = jax.nn.sigmoid(g[3 * H:4 * H])
        c = f * c + i * gg
        h = o * jnp.tanh(c)
        return (h, c), h

    _, lstm_out = lax.scan(step, (jnp.zeros(H), jnp.zeros(H)), lstm_in)

    hz = jnp.maximum(lstm_out @ params["w1"] + params["b1"][0], 0.0)
    mu, log_var = hz[:, :L], hz[:, L:]
    z = mu + eps * jnp.exp(0.5 * log_var)
    recon = jax.nn.sigmoid(z @ params["w2"] + params["b2"][0])
    return recon.reshape(T, N, Fd), mu, log_var


if __name__ == "__main__":
    # Model hyper-parameters (consistent with the PyTorch module):
    num_nodes = 10                 # microservices
    num_features_per_node = 7      # node_features list
    rgcn_in_channels = num_features_per_node
    rgcn_out_channels = 16
    lstm_hidden_size = 32
    vae_latent_size = 16
    seq_len = 8
    num_relations = 2

    key = jax.random.PRNGKey(0)
    k_x, k_p, k_eps = jax.random.split(key, 3)

    # Input: (seq_len, num_nodes, num_features)
    x = jax.random.normal(k_x, (seq_len, num_nodes, num_features_per_node),
                          dtype=jnp.float32)

    # Deterministic graph: bidirectional ring over the 10 services, all edges
    # of relation type 0 (edge_type = zeros, like the reference module).
    src = list(range(num_nodes)) + [(i + 1) % num_nodes for i in range(num_nodes)]
    dst = [(i + 1) % num_nodes for i in range(num_nodes)] + list(range(num_nodes))
    edge_index = np.stack([np.array(src), np.array(dst)], axis=0)
    edge_type = np.zeros(edge_index.shape[1], dtype=np.int64)

    adj = build_normalized_adjacency(edge_index, edge_type, num_nodes,
                                     num_relations)
    params = init_params(k_p, rgcn_in_channels, rgcn_out_channels, num_nodes,
                         lstm_hidden_size, vae_latent_size,
                         num_features_per_node, num_relations)
    packed = pack_params(params, adj, num_nodes)

    # Reparameterization noise (torch.randn_like), sampled deterministically.
    eps = jax.random.normal(k_eps, (seq_len, vae_latent_size), dtype=jnp.float32)

    fwd = jax.jit(rgcn_lstm_vae_forward)
    vae_out, mu, log_var = fwd(x, packed, eps)
    jax.block_until_ready((vae_out, mu, log_var))

    assert vae_out.shape == (seq_len, num_nodes, num_features_per_node)
    assert mu.shape == (seq_len, vae_latent_size)
    assert log_var.shape == (seq_len, vae_latent_size)
    assert bool(jnp.all(jnp.isfinite(vae_out)))

    # Numerics check against the straightforward plain-JAX reference.
    ref_out, ref_mu, ref_lv = reference_forward(x, adj, params, eps)
    np.testing.assert_allclose(np.asarray(vae_out), np.asarray(ref_out),
                               rtol=1e-4, atol=1e-4)
    np.testing.assert_allclose(np.asarray(mu), np.asarray(ref_mu),
                               rtol=1e-4, atol=1e-4)
    np.testing.assert_allclose(np.asarray(log_var), np.asarray(ref_lv),
                               rtol=1e-4, atol=1e-4)

    print("KERNEL_OK")
</pallas_src>

<mosaic_0001>
module attributes {stable_mosaic.version = 11 : i64} {
  func.func @fused_rgcn_lstm_vae_kernel(%arg0: memref<8x70xf32, #tpu.memory_space<vmem>>, %arg1: memref<70x160xf32, #tpu.memory_space<vmem>>, %arg2: memref<1x160xf32, #tpu.memory_space<vmem>>, %arg3: memref<160x128xf32, #tpu.memory_space<vmem>>, %arg4: memref<32x128xf32, #tpu.memory_space<vmem>>, %arg5: memref<1x128xf32, #tpu.memory_space<vmem>>, %arg6: memref<32x128xf32, #tpu.memory_space<vmem>>, %arg7: memref<1x128xf32, #tpu.memory_space<vmem>>, %arg8: memref<16x128xf32, #tpu.memory_space<vmem>>, %arg9: memref<1x128xf32, #tpu.memory_space<vmem>>, %arg10: memref<8x16xf32, #tpu.memory_space<vmem>>, %arg11: memref<8x128xf32, #tpu.memory_space<vmem>>, %arg12: memref<8x128xf32, #tpu.memory_space<vmem>>) attributes {dimension_semantics = [], scalar_prefetch = 0 : i64, scratch_operands = 0 : i64, tpu.core_type = #tpu.core_type<tc>} {
    %c0 = arith.constant 0 : index
    %c0_0 = arith.constant 0 : index
    %0 = vector.load %arg0[%c0, %c0_0] : memref<8x70xf32, #tpu.memory_space<vmem>>, vector<8x70xf32>
    %c0_1 = arith.constant 0 : index
    %c0_2 = arith.constant 0 : index
    %1 = vector.load %arg1[%c0_1, %c0_2] : memref<70x160xf32, #tpu.memory_space<vmem>>, vector<70x160xf32>
    %cst = arith.constant dense<0.000000e+00> : vector<8x160xf32>
    %2 = tpu.matmul %0, %1, %cst {dimension_numbers = #tpu.dot_dimension_numbers<[1], [0], [0], [1], [0, 0, 1, 1], [], []>} : vector<8x70xf32>, vector<70x160xf32>, vector<8x160xf32> -> vector<8x160xf32>
    %c0_3 = arith.constant 0 : index
    %c0_4 = arith.constant 0 : index
    %3 = vector.load %arg2[%c0_3, %c0_4] : memref<1x160xf32, #tpu.memory_space<vmem>>, vector<1x160xf32>
    %4 = vector.broadcast %3 : vector<1x160xf32> to vector<8x160xf32>
    %5 = arith.addf %2, %4 : vector<8x160xf32>
    %c0_5 = arith.constant 0 : index
    %c0_6 = arith.constant 0 : index
    %6 = vector.load %arg3[%c0_5, %c0_6] : memref<160x128xf32, #tpu.memory_space<vmem>>, vector<160x128xf32>
    %cst_7 = arith.constant dense<0.000000e+00> : vector<8x128xf32>
    %7 = tpu.matmul %5, %6, %cst_7 {dimension_numbers = #tpu.dot_dimension_numbers<[1], [0], [0], [1], [0, 0, 1, 1], [], []>} : vector<8x160xf32>, vector<160x128xf32>, vector<8x128xf32> -> vector<8x128xf32>
    %c0_8 = arith.constant 0 : index
    %c0_9 = arith.constant 0 : index
    %8 = vector.load %arg5[%c0_8, %c0_9] : memref<1x128xf32, #tpu.memory_space<vmem>>, vector<1x128xf32>
    %9 = vector.broadcast %8 : vector<1x128xf32> to vector<8x128xf32>
    %10 = arith.addf %7, %9 : vector<8x128xf32>
    %c0_10 = arith.constant 0 : index
    %c0_11 = arith.constant 0 : index
    %11 = vector.load %arg4[%c0_10, %c0_11] : memref<32x128xf32, #tpu.memory_space<vmem>>, vector<32x128xf32>
    %cst_12 = arith.constant 0.000000e+00 : f32
    %12 = vector.broadcast %cst_12 : f32 to vector<1x32xf32>
    %cst_13 = arith.constant 0.000000e+00 : f32
    %13 = vector.broadcast %cst_13 : f32 to vector<1x32xf32>
    %14 = vector.extract_strided_slice %10 {offsets = [0, 0], sizes = [1, 128], strides = [1, 1]} : vector<8x128xf32> to vector<1x128xf32>
    %cst_14 = arith.constant dense<0.000000e+00> : vector<1x128xf32>
    %15 = tpu.matmul %12, %11, %cst_14 {dimension_numbers = #tpu.dot_dimension_numbers<[1], [0], [0], [1], [0, 0, 1, 1], [], []>} : vector<1x32xf32>, vector<32x128xf32>, vector<1x128xf32> -> vector<1x128xf32>
    %16 = arith.addf %14, %15 : vector<1x128xf32>
    %17 = arith.negf %16 : vector<1x128xf32>
    %18 = math.exp %17 : vector<1x128xf32>
    %cst_15 = arith.constant 1.000000e+00 : f32
    %19 = vector.broadcast %cst_15 : f32 to vector<1x128xf32>
    %20 = arith.addf %19, %18 : vector<1x128xf32>
    %21 = arith.divf %19, %20 : vector<1x128xf32>
    %22 = vector.extract_strided_slice %16 {offsets = [0, 64], sizes = [1, 32], strides = [1, 1]} : vector<1x128xf32> to vector<1x32xf32>
    %23 = math.tanh %22 : vector<1x32xf32>
    %24 = vector.extract_strided_slice %21 {offsets = [0, 0], sizes = [1, 32], strides = [1, 1]} : vector<1x128xf32> to vector<1x32xf32>
    %25 = vector.extract_strided_slice %21 {offsets = [0, 32], sizes = [1, 32], strides = [1, 1]} : vector<1x128xf32> to vector<1x32xf32>
    %26 = vector.extract_strided_slice %21 {offsets = [0, 96], sizes = [1, 32], strides = [1, 1]} : vector<1x128xf32> to vector<1x32xf32>
    %27 = arith.mulf %25, %13 : vector<1x32xf32>
    %28 = arith.mulf %24, %23 : vector<1x32xf32>
    %29 = arith.addf %27, %28 : vector<1x32xf32>
    %30 = math.tanh %29 : vector<1x32xf32>
    %31 = arith.mulf %26, %30 : vector<1x32xf32>
    %32 = vector.extract_strided_slice %10 {offsets = [1, 0], sizes = [1, 128], strides = [1, 1]} : vector<8x128xf32> to vector<1x128xf32>
    %cst_16 = arith.constant dense<0.000000e+00> : vector<1x128xf32>
    %33 = tpu.matmul %31, %11, %cst_16 {dimension_numbers = #tpu.dot_dimension_numbers<[1], [0], [0], [1], [0, 0, 1, 1], [], []>} : vector<1x32xf32>, vector<32x128xf32>, vector<1x128xf32> -> vector<1x128xf32>
    %34 = arith.addf %32, %33 : vector<1x128xf32>
    %35 = arith.negf %34 : vector<1x128xf32>
    %36 = math.exp %35 : vector<1x128xf32>
    %cst_17 = arith.constant 1.000000e+00 : f32
    %37 = vector.broadcast %cst_17 : f32 to vector<1x128xf32>
    %38 = arith.addf %37, %36 : vector<1x128xf32>
    %39 = arith.divf %37, %38 : vector<1x128xf32>
    %40 = vector.extract_strided_slice %34 {offsets = [0, 64], sizes = [1, 32], strides = [1, 1]} : vector<1x128xf32> to vector<1x32xf32>
    %41 = math.tanh %40 : vector<1x32xf32>
    %42 = vector.extract_strided_slice %39 {offsets = [0, 0], sizes = [1, 32], strides = [1, 1]} : vector<1x128xf32> to vector<1x32xf32>
    %43 = vector.extract_strided_slice %39 {offsets = [0, 32], sizes = [1, 32], strides = [1, 1]} : vector<1x128xf32> to vector<1x32xf32>
    %44 = vector.extract_strided_slice %39 {offsets = [0, 96], sizes = [1, 32], strides = [1, 1]} : vector<1x128xf32> to vector<1x32xf32>
    %45 = arith.mulf %43, %29 : vector<1x32xf32>
    %46 = arith.mulf %42, %41 : vector<1x32xf32>
    %47 = arith.addf %45, %46 : vector<1x32xf32>
    %48 = math.tanh %47 : vector<1x32xf32>
    %49 = arith.mulf %44, %48 : vector<1x32xf32>
    %50 = vector.extract_strided_slice %10 {offsets = [2, 0], sizes = [1, 128], strides = [1, 1]} : vector<8x128xf32> to vector<1x128xf32>
    %cst_18 = arith.constant dense<0.000000e+00> : vector<1x128xf32>
    %51 = tpu.matmul %49, %11, %cst_18 {dimension_numbers = #tpu.dot_dimension_numbers<[1], [0], [0], [1], [0, 0, 1, 1], [], []>} : vector<1x32xf32>, vector<32x128xf32>, vector<1x128xf32> -> vector<1x128xf32>
    %52 = arith.addf %50, %51 : vector<1x128xf32>
    %53 = arith.negf %52 : vector<1x128xf32>
    %54 = math.exp %53 : vector<1x128xf32>
    %cst_19 = arith.constant 1.000000e+00 : f32
    %55 = vector.broadcast %cst_19 : f32 to vector<1x128xf32>
    %56 = arith.addf %55, %54 : vector<1x128xf32>
    %57 = arith.divf %55, %56 : vector<1x128xf32>
    %58 = vector.extract_strided_slice %52 {offsets = [0, 64], sizes = [1, 32], strides = [1, 1]} : vector<1x128xf32> to vector<1x32xf32>
    %59 = math.tanh %58 : vector<1x32xf32>
    %60 = vector.extract_strided_slice %57 {offsets = [0, 0], sizes = [1, 32], strides = [1, 1]} : vector<1x128xf32> to vector<1x32xf32>
    %61 = vector.extract_strided_slice %57 {offsets = [0, 32], sizes = [1, 32], strides = [1, 1]} : vector<1x128xf32> to vector<1x32xf32>
    %62 = vector.extract_strided_slice %57 {offsets = [0, 96], sizes = [1, 32], strides = [1, 1]} : vector<1x128xf32> to vector<1x32xf32>
    %63 = arith.mulf %61, %47 : vector<1x32xf32>
    %64 = arith.mulf %60, %59 : vector<1x32xf32>
    %65 = arith.addf %63, %64 : vector<1x32xf32>
    %66 = math.tanh %65 : vector<1x32xf32>
    %67 = arith.mulf %62, %66 : vector<1x32xf32>
    %68 = vector.extract_strided_slice %10 {offsets = [3, 0], sizes = [1, 128], strides = [1, 1]} : vector<8x128xf32> to vector<1x128xf32>
    %cst_20 = arith.constant dense<0.000000e+00> : vector<1x128xf32>
    %69 = tpu.matmul %67, %11, %cst_20 {dimension_numbers = #tpu.dot_dimension_numbers<[1], [0], [0], [1], [0, 0, 1, 1], [], []>} : vector<1x32xf32>, vector<32x128xf32>, vector<1x128xf32> -> vector<1x128xf32>
    %70 = arith.addf %68, %69 : vector<1x128xf32>
    %71 = arith.negf %70 : vector<1x128xf32>
    %72 = math.exp %71 : vector<1x128xf32>
    %cst_21 = arith.constant 1.000000e+00 : f32
    %73 = vector.broadcast %cst_21 : f32 to vector<1x128xf32>
    %74 = arith.addf %73, %72 : vector<1x128xf32>
    %75 = arith.divf %73, %74 : vector<1x128xf32>
    %76 = vector.extract_strided_slice %70 {offsets = [0, 64], sizes = [1, 32], strides = [1, 1]} : vector<1x128xf32> to vector<1x32xf32>
    %77 = math.tanh %76 : vector<1x32xf32>
    %78 = vector.extract_strided_slice %75 {offsets = [0, 0], sizes = [1, 32], strides = [1, 1]} : vector<1x128xf32> to vector<1x32xf32>
    %79 = vector.extract_strided_slice %75 {offsets = [0, 32], sizes = [1, 32], strides = [1, 1]} : vector<1x128xf32> to vector<1x32xf32>
    %80 = vector.extract_strided_slice %75 {offsets = [0, 96], sizes = [1, 32], strides = [1, 1]} : vector<1x128xf32> to vector<1x32xf32>
    %81 = arith.mulf %79, %65 : vector<1x32xf32>
    %82 = arith.mulf %78, %77 : vector<1x32xf32>
    %83 = arith.addf %81, %82 : vector<1x32xf32>
    %84 = math.tanh %83 : vector<1x32xf32>
    %85 = arith.mulf %80, %84 : vector<1x32xf32>
    %86 = vector.extract_strided_slice %10 {offsets = [4, 0], sizes = [1, 128], strides = [1, 1]} : vector<8x128xf32> to vector<1x128xf32>
    %cst_22 = arith.constant dense<0.000000e+00> : vector<1x128xf32>
    %87 = tpu.matmul %85, %11, %cst_22 {dimension_numbers = #tpu.dot_dimension_numbers<[1], [0], [0], [1], [0, 0, 1, 1], [], []>} : vector<1x32xf32>, vector<32x128xf32>, vector<1x128xf32> -> vector<1x128xf32>
    %88 = arith.addf %86, %87 : vector<1x128xf32>
    %89 = arith.negf %88 : vector<1x128xf32>
    %90 = math.exp %89 : vector<1x128xf32>
    %cst_23 = arith.constant 1.000000e+00 : f32
    %91 = vector.broadcast %cst_23 : f32 to vector<1x128xf32>
    %92 = arith.addf %91, %90 : vector<1x128xf32>
    %93 = arith.divf %91, %92 : vector<1x128xf32>
    %94 = vector.extract_strided_slice %88 {offsets = [0, 64], sizes = [1, 32], strides = [1, 1]} : vector<1x128xf32> to vector<1x32xf32>
    %95 = math.tanh %94 : vector<1x32xf32>
    %96 = vector.extract_strided_slice %93 {offsets = [0, 0], sizes = [1, 32], strides = [1, 1]} : vector<1x128xf32> to vector<1x32xf32>
    %97 = vector.extract_strided_slice %93 {offsets = [0, 32], sizes = [1, 32], strides = [1, 1]} : vector<1x128xf32> to vector<1x32xf32>
    %98 = vector.extract_strided_slice %93 {offsets = [0, 96], sizes = [1, 32], strides = [1, 1]} : vector<1x128xf32> to vector<1x32xf32>
    %99 = arith.mulf %97, %83 : vector<1x32xf32>
    %100 = arith.mulf %96, %95 : vector<1x32xf32>
    %101 = arith.addf %99, %100 : vector<1x32xf32>
    %102 = math.tanh %101 : vector<1x32xf32>
    %103 = arith.mulf %98, %102 : vector<1x32xf32>
    %104 = vector.extract_strided_slice %10 {offsets = [5, 0], sizes = [1, 128], strides = [1, 1]} : vector<8x128xf32> to vector<1x128xf32>
    %cst_24 = arith.constant dense<0.000000e+00> : vector<1x128xf32>
    %105 = tpu.matmul %103, %11, %cst_24 {dimension_numbers = #tpu.dot_dimension_numbers<[1], [0], [0], [1], [0, 0, 1, 1], [], []>} : vector<1x32xf32>, vector<32x128xf32>, vector<1x128xf32> -> vector<1x128xf32>
    %106 = arith.addf %104, %105 : vector<1x128xf32>
    %107 = arith.negf %106 : vector<1x128xf32>
    %108 = math.exp %107 : vector<1x128xf32>
    %cst_25 = arith.constant 1.000000e+00 : f32
    %109 = vector.broadcast %cst_25 : f32 to vector<1x128xf32>
    %110 = arith.addf %109, %108 : vector<1x128xf32>
    %111 = arith.divf %109, %110 : vector<1x128xf32>
    %112 = vector.extract_strided_slice %106 {offsets = [0, 64], sizes = [1, 32], strides = [1, 1]} : vector<1x128xf32> to vector<1x32xf32>
    %113 = math.tanh %112 : vector<1x32xf32>
    %114 = vector.extract_strided_slice %111 {offsets = [0, 0], sizes = [1, 32], strides = [1, 1]} : vector<1x128xf32> to vector<1x32xf32>
    %115 = vector.extract_strided_slice %111 {offsets = [0, 32], sizes = [1, 32], strides = [1, 1]} : vector<1x128xf32> to vector<1x32xf32>
    %116 = vector.extract_strided_slice %111 {offsets = [0, 96], sizes = [1, 32], strides = [1, 1]} : vector<1x128xf32> to vector<1x32xf32>
    %117 = arith.mulf %115, %101 : vector<1x32xf32>
    %118 = arith.mulf %114, %113 : vector<1x32xf32>
    %119 = arith.addf %117, %118 : vector<1x32xf32>
    %120 = math.tanh %119 : vector<1x32xf32>
    %121 = arith.mulf %116, %120 : vector<1x32xf32>
    %122 = vector.extract_strided_slice %10 {offsets = [6, 0], sizes = [1, 128], strides = [1, 1]} : vector<8x128xf32> to vector<1x128xf32>
    %cst_26 = arith.constant dense<0.000000e+00> : vector<1x128xf32>
    %123 = tpu.matmul %121, %11, %cst_26 {dimension_numbers = #tpu.dot_dimension_numbers<[1], [0], [0], [1], [0, 0, 1, 1], [], []>} : vector<1x32xf32>, vector<32x128xf32>, vector<1x128xf32> -> vector<1x128xf32>
    %124 = arith.addf %122, %123 : vector<1x128xf32>
    %125 = arith.negf %124 : vector<1x128xf32>
    %126 = math.exp %125 : vector<1x128xf32>
    %cst_27 = arith.constant 1.000000e+00 : f32
    %127 = vector.broadcast %cst_27 : f32 to vector<1x128xf32>
    %128 = arith.addf %127, %126 : vector<1x128xf32>
    %129 = arith.divf %127, %128 : vector<1x128xf32>
    %130 = vector.extract_strided_slice %124 {offsets = [0, 64], sizes = [1, 32], strides = [1, 1]} : vector<1x128xf32> to vector<1x32xf32>
    %131 = math.tanh %130 : vector<1x32xf32>
    %132 = vector.extract_strided_slice %129 {offsets = [0, 0], sizes = [1, 32], strides = [1, 1]} : vector<1x128xf32> to vector<1x32xf32>
    %133 = vector.extract_strided_slice %129 {offsets = [0, 32], sizes = [1, 32], strides = [1, 1]} : vector<1x128xf32> to vector<1x32xf32>
    %134 = vector.extract_strided_slice %129 {offsets = [0, 96], sizes = [1, 32], strides = [1, 1]} : vector<1x128xf32> to vector<1x32xf32>
    %135 = arith.mulf %133, %119 : vector<1x32xf32>
    %136 = arith.mulf %132, %131 : vector<1x32xf32>
    %137 = arith.addf %135, %136 : vector<1x32xf32>
    %138 = math.tanh %137 : vector<1x32xf32>
    %139 = arith.mulf %134, %138 : vector<1x32xf32>
    %140 = vector.extract_strided_slice %10 {offsets = [7, 0], sizes = [1, 128], strides = [1, 1]} : vector<8x128xf32> to vector<1x128xf32>
    %cst_28 = arith.constant dense<0.000000e+00> : vector<1x128xf32>
    %141 = tpu.matmul %139, %11, %cst_28 {dimension_numbers = #tpu.dot_dimension_numbers<[1], [0], [0], [1], [0, 0, 1, 1], [], []>} : vector<1x32xf32>, vector<32x128xf32>, vector<1x128xf32> -> vector<1x128xf32>
    %142 = arith.addf %140, %141 : vector<1x128xf32>
    %143 = arith.negf %142 : vector<1x128xf32>
    %144 = math.exp %143 : vector<1x128xf32>
    %cst_29 = arith.constant 1.000000e+00 : f32
    %145 = vector.broadcast %cst_29 : f32 to vector<1x128xf32>
    %146 = arith.addf %145, %144 : vector<1x128xf32>
    %147 = arith.divf %145, %146 : vector<1x128xf32>
    %148 = vector.extract_strided_slice %142 {offsets = [0, 64], sizes = [1, 32], strides = [1, 1]} : vector<1x128xf32> to vector<1x32xf32>
    %149 = math.tanh %148 : vector<1x32xf32>
    %150 = vector.extract_strided_slice %147 {offsets = [0, 0], sizes = [1, 32], strides = [1, 1]} : vector<1x128xf32> to vector<1x32xf32>
    %151 = vector.extract_strided_slice %147 {offsets = [0, 32], sizes = [1, 32], strides = [1, 1]} : vector<1x128xf32> to vector<1x32xf32>
    %152 = vector.extract_strided_slice %147 {offsets = [0, 96], sizes = [1, 32], strides = [1, 1]} : vector<1x128xf32> to vector<1x32xf32>
    %153 = arith.mulf %151, %137 : vector<1x32xf32>
    %154 = arith.mulf %150, %149 : vector<1x32xf32>
    %155 = arith.addf %153, %154 : vector<1x32xf32>
    %156 = math.tanh %155 : vector<1x32xf32>
    %157 = arith.mulf %152, %156 : vector<1x32xf32>
    %158 = tpu.concatenate %31, %49, %67, %85, %103, %121, %139, %157 in 0 : vector<1x32xf32>, vector<1x32xf32>, vector<1x32xf32>, vector<1x32xf32>, vector<1x32xf32>, vector<1x32xf32>, vector<1x32xf32>, vector<1x32xf32> -> vector<8x32xf32>
    %c0_30 = arith.constant 0 : index
    %c0_31 = arith.constant 0 : index
    %159 = vector.load %arg6[%c0_30, %c0_31] : memref<32x128xf32, #tpu.memory_space<vmem>>, vector<32x128xf32>
    %cst_32 = arith.constant dense<0.000000e+00> : vector<8x128xf32>
    %160 = tpu.matmul %158, %159, %cst_32 {dimension_numbers = #tpu.dot_dimension_numbers<[1], [0], [0], [1], [0, 0, 1, 1], [], []>} : vector<8x32xf32>, vector<32x128xf32>, vector<8x128xf32> -> vector<8x128xf32>
    %c0_33 = arith.constant 0 : index
    %c0_34 = arith.constant 0 : index
    %161 = vector.load %arg7[%c0_33, %c0_34] : memref<1x128xf32, #tpu.memory_space<vmem>>, vector<1x128xf32>
    %162 = vector.broadcast %161 : vector<1x128xf32> to vector<8x128xf32>
    %163 = arith.addf %160, %162 : vector<8x128xf32>
    %cst_35 = arith.constant 0.000000e+00 : f32
    %164 = vector.broadcast %cst_35 : f32 to vector<8x128xf32>
    %165 = arith.maximumf %163, %164 : vector<8x128xf32>
    %166 = vector.extract_strided_slice %165 {offsets = [0, 0], sizes = [8, 16], strides = [1, 1]} : vector<8x128xf32> to vector<8x16xf32>
    %167 = vector.extract_strided_slice %165 {offsets = [0, 16], sizes = [8, 16], strides = [1, 1]} : vector<8x128xf32> to vector<8x16xf32>
    %c0_36 = arith.constant 0 : index
    %c0_37 = arith.constant 0 : index
    %168 = vector.load %arg10[%c0_36, %c0_37] : memref<8x16xf32, #tpu.memory_space<vmem>>, vector<8x16xf32>
    %cst_38 = arith.constant 5.000000e-01 : f32
    %169 = vector.broadcast %cst_38 : f32 to vector<8x16xf32>
    %170 = arith.mulf %169, %167 : vector<8x16xf32>
    %171 = math.exp %170 : vector<8x16xf32>
    %172 = arith.mulf %168, %171 : vector<8x16xf32>
    %173 = arith.addf %166, %172 : vector<8x16xf32>
    %c0_39 = arith.constant 0 : index
    %c0_40 = arith.constant 0 : index
    %174 = vector.load %arg8[%c0_39, %c0_40] : memref<16x128xf32, #tpu.memory_space<vmem>>, vector<16x128xf32>
    %cst_41 = arith.constant dense<0.000000e+00> : vector<8x128xf32>
    %175 = tpu.matmul %173, %174, %cst_41 {dimension_numbers = #tpu.dot_dimension_numbers<[1], [0], [0], [1], [0, 0, 1, 1], [], []>} : vector<8x16xf32>, vector<16x128xf32>, vector<8x128xf32> -> vector<8x128xf32>
    %c0_42 = arith.constant 0 : index
    %c0_43 = arith.constant 0 : index
    %176 = vector.load %arg9[%c0_42, %c0_43] : memref<1x128xf32, #tpu.memory_space<vmem>>, vector<1x128xf32>
    %177 = vector.broadcast %176 : vector<1x128xf32> to vector<8x128xf32>
    %178 = arith.addf %175, %177 : vector<8x128xf32>
    %179 = arith.negf %178 : vector<8x128xf32>
    %180 = math.exp %179 : vector<8x128xf32>
    %cst_44 = arith.constant 1.000000e+00 : f32
    %181 = vector.broadcast %cst_44 : f32 to vector<8x128xf32>
    %182 = arith.addf %181, %180 : vector<8x128xf32>
    %183 = arith.divf %181, %182 : vector<8x128xf32>
    %c0_45 = arith.constant 0 : index
    %c0_46 = arith.constant 0 : index
    %184 = vector.load %arg11[%c0_45, %c0_46] : memref<8x128xf32, #tpu.memory_space<vmem>>, vector<8x128xf32>
    tpu.vector_store %arg11[%c0_45, %c0_46], %183 {strides = array<i32>} : memref<8x128xf32, #tpu.memory_space<vmem>>, vector<8x128xf32>,
    %c0_47 = arith.constant 0 : index
    %c0_48 = arith.constant 0 : index
    %185 = vector.load %arg12[%c0_47, %c0_48] : memref<8x128xf32, #tpu.memory_space<vmem>>, vector<8x128xf32>
    tpu.vector_store %arg12[%c0_47, %c0_48], %165 {strides = array<i32>} : memref<8x128xf32, #tpu.memory_space<vmem>>, vector<8x128xf32>,
    return
  }
}

</mosaic_0001>

<bundles_post_ra>
// kernel: rgcn_lstm_vae_forward.1
= control target key start
LH: loop header
LB: loop body
LE: loop exit
PB: predicated region body
PF: predicated region fallthrough
CT: control target
= control target key end

     0   :  { %18 = vsyncpa [#allocation3], 0  ;;  %s2315_s0 = inlined_call_operand.vmem [shape: f32[8,70], index: 0, kind: input, shape index: {}]   ;;  %s2316_s1 = inlined_call_operand.vmem [shape: f32[70,160], index: 1, kind: input, shape index: {}]   ;;  %s2317_s2 = inlined_call_operand.vmem [shape: f32[1,160], index: 2, kind: input, shape index: {}]   ;;  %s2318_s3 = inlined_call_operand.vmem [shape: f32[160,128], index: 3, kind: input, shape index: {}]   ;;  %s2319_s4 = inlined_call_operand.vmem [shape: f32[32,128], index: 4, kind: input, shape index: {}]   ;;  %s2320_s5 = inlined_call_operand.hbm [shape: f32[1,128], index: 5, kind: input, shape index: {}]   ;;  %s2321_s6 = inlined_call_operand.hbm [shape: f32[32,128], index: 6, kind: input, shape index: {}]   ;;  %s2322_s7 = inlined_call_operand.hbm [shape: f32[1,128], index: 7, kind: input, shape index: {}]   ;;  %s2323_s8 = inlined_call_operand.hbm [shape: f32[16,128], index: 8, kind: input, shape index: {}]   ;;  %s2324_s9 = inlined_call_operand.hbm [shape: f32[1,128], index: 9, kind: input, shape index: {}]   ;;  %s2325_s10 = inlined_call_operand.hbm [shape: f32[8,16], index: 10, kind: input, shape index: {}]   ;;  %s2326_s11 = inlined_call_operand.vmem [shape: f32[8,128], index: 11, kind: output, shape index: {0}]   ;;  %s2327_s12 = inlined_call_operand.vmem [shape: f32[8,128], index: 12, kind: output, shape index: {1}]  }
   0x1   :  { %19 = vsyncpa [#allocation5], 0 }
   0x2   :  { %20 = vsyncpa [#allocation8], 0 }
   0x3   :  { %21 = vsyncpa [#allocation11], 0  ;;  %s1897_s21 = smov [#allocation4]   ;;  %s1757_s25 = scalar_lea.hbm %s2321_s6, 512 }
   0x4   :  { %s47_s22 = sshll.u32 %s1897_s21, 4  ;;  %p1758_p0 = scmp.ne.s32.totalorder %s2321_s6, %s1757_s25  ;;  %s48_s22 = int_to_ptr.vmem [resolvable:$true] %s47_s22 }
   0x5   :  { %p1761_p1 = scmp.lt.u32.totalorder %s1757_s25, %s2321_s6 }
   0x7   :  { %p1763_p2 = pnand %p1761_p1, %p1758_p0 }
   0x9   :  { %1766 = shalt.err (!%p1763_p2)
}
   0xa   :  { %s1767_s30 = scalar_lea.vmem %s48_s22, 512  ;;  %p1772_p4 = scmp.lt.s32.totalorder %s48_s22, %s48_s22 }
   0xb   :  { %p1768_p3 = scmp.ne.s32.totalorder %s48_s22, %s1767_s30  ;;  %p1773_p5 = scmp.lt.s32.totalorder %s1767_s30, %s1767_s30 }
   0xd   :  { %p1774_p6 = por %p1773_p5, %p1772_p4 }
   0xf   :  { %p1775_p7 = pnand %p1774_p6, %p1768_p3 }
  0x11   :  { %1778 = shalt.err (!%p1775_p7)
}
  0x12   :  { %s1898_s13 = smov 128   ;;  %s1899_s14 = smov 8  }
  0x13   :  { %53 = dma.hbm_to_vmem [thread:$0]  %s2321_s6, 512, %s48_s22, [#allocation5], %s1898_s13, %s1898_s13, %s1899_s14  }
  0x14   :  { %s1900_s17 = smov [#allocation7]   ;;  %s1901_s19 = smov [#allocation2]  }
  0x15   :  { %s69_s18 = sshll.u32 %s1900_s17, 4  ;;  %s38_s20 = sshll.u32 %s1901_s19, 4  ;;  %s70_s18 = int_to_ptr.vmem [resolvable:$true] %s69_s18  ;;  %s39_s20 = int_to_ptr.vmem [resolvable:$true] %s38_s20 }
  0x16   :  { %s1779_s24 = scalar_lea.hbm %s2323_s8, 256 }
  0x17   :  { %p1780_p8 = scmp.ne.s32.totalorder %s2323_s8, %s1779_s24  ;;  %p1783_p9 = scmp.lt.u32.totalorder %s1779_s24, %s2323_s8 }
  0x19   :  { %p1785_p10 = pnand %p1783_p9, %p1780_p8 }
  0x1b   :  { %1788 = shalt.err (!%p1785_p10)
}
  0x1c   :  { %s1789_s6 = scalar_lea.vmem %s70_s18, 256  ;;  %p1794_p12 = scmp.lt.s32.totalorder %s70_s18, %s70_s18 }
  0x1d   :  { %p1790_p11 = scmp.ne.s32.totalorder %s70_s18, %s1789_s6  ;;  %p1795_p13 = scmp.lt.s32.totalorder %s1789_s6, %s1789_s6 }
  0x1f   :  { %p1796_p0 = por %p1795_p13, %p1794_p12 }
  0x21   :  { %p1797_p1 = pnand %p1796_p0, %p1790_p11 }
  0x23   :  { %1800 = shalt.err (!%p1797_p1)
}
  0x24   :  { %75 = dma.hbm_to_vmem [thread:$0]  %s2323_s8, 256, %s70_s18, [#allocation8], %s1898_s13, %s1898_s13, %s1899_s14  }
  0x25   :  { %s1801_s16 = scalar_lea.hbm %s2320_s5, 16 }
  0x26   :  { %p1802_p2 = scmp.ne.s32.totalorder %s2320_s5, %s1801_s16  ;;  %p1805_p3 = scmp.lt.u32.totalorder %s1801_s16, %s2320_s5 }
  0x28   :  { %p1807_p4 = pnand %p1805_p3, %p1802_p2 }
  0x2a   :  { %1810 = shalt.err (!%p1807_p4)
}
  0x2b   :  { %s1811_s24 = scalar_lea.vmem %s39_s20, 16  ;;  %s1815_s25 = scalar_lea.vmem %s39_s20, 32 }
  0x2c   :  { %p1812_p5 = scmp.ne.s32.totalorder %s39_s20, %s1811_s24  ;;  %p1816_p6 = scmp.lt.s32.totalorder %s39_s20, %s39_s20 }
  0x2d   :  { %p1817_p7 = scmp.lt.s32.totalorder %s1815_s25, %s1811_s24 }
  0x2f   :  { %p1818_p8 = por %p1817_p7, %p1816_p6 }
  0x31   :  { %p1819_p9 = pnand %p1818_p8, %p1812_p5 }
  0x33   :  { %1822 = shalt.err (!%p1819_p9)
}
  0x34   :  { %41 = dma.hbm_to_vmem [thread:$0]  %s2320_s5, 16, %s39_s20, [#allocation3]  }
  0x35   :  { %s1902_s14 = smov [#allocation6]   ;;  %s1903_s26 = smov [#allocation9]  }
  0x36   :  { %s60_s18 = sshll.u32 %s1902_s14, 4  ;;  %s82_s27 = sshll.u32 %s1903_s26, 4  ;;  %s61_s18 = int_to_ptr.vmem [resolvable:$true] %s60_s18  ;;  %s83_s27 = int_to_ptr.vmem [resolvable:$true] %s82_s27 }
  0x37   :  { %s1823_s22 = scalar_lea.hbm %s2322_s7, 16 }
  0x38   :  { %p1824_p10 = scmp.ne.s32.totalorder %s2322_s7, %s1823_s22  ;;  %p1827_p11 = scmp.lt.u32.totalorder %s1823_s22, %s2322_s7 }
  0x3a   :  { %p1829_p12 = pnand %p1827_p11, %p1824_p10 }
  0x3c   :  { %1832 = shalt.err (!%p1829_p12)
}
  0x3d   :  { %s1833_s5 = scalar_lea.vmem %s61_s18, 16  ;;  %s1837_s20 = scalar_lea.vmem %s61_s18, 32 }
  0x3e   :  { %p1834_p13 = scmp.ne.s32.totalorder %s61_s18, %s1833_s5  ;;  %p1838_p0 = scmp.lt.s32.totalorder %s61_s18, %s61_s18 }
  0x3f   :  { %p1839_p1 = scmp.lt.s32.totalorder %s1837_s20, %s1833_s5 }
  0x41   :  { %p1840_p2 = por %p1839_p1, %p1838_p0 }
  0x43   :  { %p1841_p3 = pnand %p1840_p2, %p1834_p13 }
  0x45   :  { %1844 = shalt.err (!%p1841_p3)
}
  0x46   :  { %63 = dma.hbm_to_vmem [thread:$0]  %s2322_s7, 16, %s61_s18, [#allocation5]  }
  0x47   :  { %s1845_s24 = scalar_lea.hbm %s2324_s9, 16 }
  0x48   :  { %p1846_p4 = scmp.ne.s32.totalorder %s2324_s9, %s1845_s24  ;;  %p1849_p5 = scmp.lt.u32.totalorder %s1845_s24, %s2324_s9 }
  0x4a   :  { %p1851_p6 = pnand %p1849_p5, %p1846_p4 }
  0x4c   :  { %1854 = shalt.err (!%p1851_p6)
}
  0x4d   :  { %s1855_s26 = scalar_lea.vmem %s83_s27, 16  ;;  %s1859_s28 = scalar_lea.vmem %s83_s27, 32 }
  0x4e   :  { %p1856_p7 = scmp.ne.s32.totalorder %s83_s27, %s1855_s26  ;;  %p1860_p8 = scmp.lt.s32.totalorder %s83_s27, %s83_s27 }
  0x4f   :  { %p1861_p9 = scmp.lt.s32.totalorder %s1859_s28, %s1855_s26 }
  0x51   :  { %p1862_p10 = por %p1861_p9, %p1860_p8 }
  0x53   :  { %p1863_p11 = pnand %p1862_p10, %p1856_p7 }
  0x55   :  { %1866 = shalt.err (!%p1863_p11)
}
  0x56   :  { %85 = dma.hbm_to_vmem [thread:$0]  %s2324_s9, 16, %s83_s27, [#allocation8]  }
  0x57   :  { %s1904_s6 = smov [#allocation10]   ;;  %s1867_s15 = scalar_lea.hbm %s2325_s10, 128 }
  0x58   :  { %s92_s22 = sshll.u32 %s1904_s6, 4  ;;  %p1868_p12 = scmp.ne.s32.totalorder %s2325_s10, %s1867_s15  ;;  %s93_s22 = int_to_ptr.vmem [resolvable:$true] %s92_s22 }
  0x59   :  { %p1871_p13 = scmp.lt.u32.totalorder %s1867_s15, %s2325_s10 }
  0x5b   :  { %p1873_p0 = pnand %p1871_p13, %p1868_p12 }
  0x5d   :  { %1876 = shalt.err (!%p1873_p0)
}
  0x5e   :  { %s1877_s19 = scalar_lea.vmem %s93_s22, 128  ;;  %p1882_p2 = scmp.lt.s32.totalorder %s93_s22, %s93_s22 }
  0x5f   :  { %p1878_p1 = scmp.ne.s32.totalorder %s93_s22, %s1877_s19  ;;  %p1883_p3 = scmp.lt.s32.totalorder %s1877_s19, %s1877_s19 }
  0x61   :  { %p1884_p4 = por %p1883_p3, %p1882_p2 }
  0x63   :  { %p1885_p5 = pnand %p1884_p4, %p1878_p1 }
  0x65   :  { %1888 = shalt.err (!%p1885_p5)
}
  0x66   :  { %95 = dma.hbm_to_vmem [thread:$0]  %s2325_s10, 128, %s93_s22, [#allocation11]  }
  0x67   :  { %1889 = dma.done.wait [#allocation3], 16  }
  0x68   :  { %1890 = vsyncadd [#allocation3], 4294967280 }
  0x69   :  { %1891 = dma.done.wait [#allocation5], 528  }
  0x6a   :  { %1892 = vsyncadd [#allocation5], 4294966768 }
  0x6b   :  { %1893 = dma.done.wait [#allocation8], 272  }
  0x6c   :  { %1894 = vsyncadd [#allocation8], 4294967024 }
  0x6d   :  { %1895 = dma.done.wait [#allocation11], 128  }
  0x6e   :  { %1896 = vsyncadd [#allocation11], 4294967168  ;;  %v1905_v0 = vmov 0.0   ;;  %v1906_v1 = vmov 0.0|0.0   ;;  %v116_v2 = vld [vmem:[%s2316_s1 + $0x8] sm:$0xff]  ;;  %v118_v3 = vld [vmem:[%s2316_s1 + $0x18] sm:$0xff] }
  0x6f   :  { %220 = vmatprep.mubr.f32.mxu0 %v1905_v0  ;;  %1586 = vmatprep.subr.bf16.mxu1 %v1906_v1  ;;  %v115_v4 = vld [vmem:[%s2316_s1] sm:$0xff]  ;;  %v1570_v5 = vpack.c.bf16 %v118_v3, %v116_v2  ;;  %v117_v6 = vld [vmem:[%s2316_s1 + $0x10] sm:$0xff]  ;;  %v120_v7 = vld [vmem:[%s2316_s1 + $0x28] sm:$0xff]  ;;  %vm149_vm0 = vcmask 1045504   ;;  %vm145_vm1 = vcmask 572416   ;;  %vm1907_vm2 = vmmov 0  }
  0x70   :  { %v122_v8 = vld [vmem:[%s2316_s1 + $0x38] sm:$0xff]  ;;  %v1572_v9 = vpack.c.bf16 %v117_v6, %v115_v4  ;;  %v119_v11 = vld [vmem:[%s2316_s1 + $0x20] sm:$0xff]  ;;  %v121_v12 = vld [vmem:[%s2316_s1 + $0x30] sm:$0xff]  ;;  %v135_v3 = vlaneseq  ;;  %vm254_vm3 = vcmask 261120   ;;  %s1909_s6 = smov 32   ;;  %vm1178_vm4 = vcmask 1040384  }
  0x71   :  { %v1574_v10 = vpack.c.bf16 %v122_v8, %v120_v7  ;;  %v124_v13 = vld [vmem:[%s2316_s1 + $0x48] sm:$0xff]  ;;  %1571 = vmatprep.subr.bf16.mxu0 %v1570_v5  ;;  %v126_v14 = vld [vmem:[%s2316_s1 + $0x58] sm:$0xff]  ;;  %v1576_v15 = vpack.c.bf16 %v121_v12, %v119_v11  ;;  %v123_v17 = vld [vmem:[%s2316_s1 + $0x40] sm:$0xff]  ;;  %vm1180_vm5 = vcmask 1041408   ;;  %vm1182_vm6 = vcmask 1042432  }
  0x72   :  { %1573 = vmatpush1.bf16.msra.mxu0 %v1572_v9  ;;  %v1578_v16 = vpack.c.bf16 %v126_v14, %v124_v13  ;;  %v125_v18 = vld [vmem:[%s2316_s1 + $0x50] sm:$0xff]  ;;  %v128_v19 = vld [vmem:[%s2316_s1 + $0x68] sm:$0xff]  ;;  %v130_v20 = vld [vmem:[%s2316_s1 + $0x78] sm:$0xff]  ;;  %v136_v4 = vshrl.u32 %v135_v3, 7  ;;  %vm1184_vm7 = vcmask 1043456   ;;  %vm1186_vm8 = vcmask 1044480  }
  0x73   :  { %1575 = vmatprep.subr.bf16.mxu0 %v1574_v10  ;;  %v227_v21 = vld [vmem:[%s2318_s3] sm:$0xff]  ;;  %v228_v22 = vld [vmem:[%s2318_s3 + $0x8] sm:$0xff]  ;;  %v229_v24 = vld [vmem:[%s2318_s3 + $0x10] sm:$0xff]  ;;  %v1580_v26 = vpack.c.bf16 %v125_v18, %v123_v17  ;;  %v1582_v27 = vpack.c.bf16 %v130_v20, %v128_v19  ;;  %vm1189_vm9 = vcmask 1046528   ;;  %vm1297_vm10 = vcmask 130048  }
  0x74   :  { %v1587_v23 = vpack.c.bf16 %v228_v22, %v227_v21  ;;  %v230_v25 = vld [vmem:[%s2318_s3 + $0x18] sm:$0xff]  ;;  %v127_v28 = vld [vmem:[%s2316_s1 + $0x60] sm:$0xff]  ;;  %v129_v29 = vld [vmem:[%s2316_s1 + $0x70] sm:$0xff]  ;;  %v141_v5 = vsub.s32 1, %v136_v4  ;;  %v137_v7 = vsub.s32 0, %v136_v4 }
  0x75   :  { %v1590_v30 = vpack.c.bf16 %v230_v25, %v229_v24  ;;  %v231_v31 = vld [vmem:[%s2318_s3 + $0x20] sm:$0xff]  ;;  %v232_v32 = vld [vmem:[%s2318_s3 + $0x28] sm:$0xff]  ;;  %v1584_v33 = vpack.c.bf16 %v129_v29, %v127_v28  ;;  %v233_v36 = vld [vmem:[%s2318_s3 + $0x30] sm:$0xff] }
  0x76   :  { %1577 = vmatpush1.bf16.msra.mxu0 %v1576_v15  ;;  %1588 = vmatpush1.bf16.msra.mxu1 %v1587_v23  ;;  %v1593_v34 = vpack.c.bf16 %v232_v32, %v231_v31  ;;  %v132_v35 = vld [vmem:[%s2316_s1 + $0x88] sm:$0x3f]  ;;  %v234_v37 = vld [vmem:[%s2318_s3 + $0x38] sm:$0xff]  ;;  %v328_v38 = vld [vmem:[%s2319_s4] sm:$0xff] }
  0x77   :  { %1579 = vmatprep.subr.bf16.mxu0 %v1578_v16  ;;  %1589 = vmatprep.subr.bf16.mxu1 %v1906_v1  ;;  %v329_v39 = vld [vmem:[%s2319_s4 + $0x8] sm:$0xff]  ;;  %v131_v40 = vld [vmem:[%s2316_s1 + $0x80] sm:$0x3f]  ;;  %v1596_v41 = vpack.c.bf16 %v234_v37, %v233_v36  ;;  %v237_v47 = vld [vmem:[%s2318_s3 + $0x50] sm:$0xff]  ;;  %s1910_s1 = smov 112  }
  0x78   :  { %v114_v42 = vld [vmem:[%s2315_s0] sm:$0xff]  ;;  %v236_v44 = vld [vmem:[%s2318_s3 + $0x48] sm:$0xff]  ;;  %v2147_v45 = vpack.c.bf16 %v329_v39, %v328_v38  ;;  %v238_v48 = vld [vmem:[%s2318_s3 + $0x58] sm:$0xff] }
  0x79   :  { %v235_v43 = vld [vmem:[%s2318_s3 + $0x40] sm:$0xff]  ;;  %v1602_v49 = vpack.c.bf16 %v238_v48, %v237_v47  ;;  %v240_v51 = vld [vmem:[%s2318_s3 + $0x68] sm:$0xff]  ;;  %v241_v53 = vld [vmem:[%s2318_s3 + $0x70] sm:$0xff] }
  0x7a   :  { %1581 = vmatpush1.bf16.msra.mxu0 %v1580_v26  ;;  %1591 = vmatpush1.bf16.msra.mxu1 %v1590_v30  ;;  %v1599_v46 = vpack.c.bf16 %v236_v44, %v235_v43  ;;  %v239_v50 = vld [vmem:[%s2318_s3 + $0x60] sm:$0xff]  ;;  %v242_v54 = vld [vmem:[%s2318_s3 + $0x78] sm:$0xff]  ;;  %v244_v57 = vld [vmem:[%s2318_s3 + $0x88] sm:$0xff] }
  0x7b   :  { %1583 = vmatprep.subr.bf16.mxu0 %v1582_v27  ;;  %1592 = vmatprep.subr.bf16.mxu1 %v1906_v1  ;;  %v1605_v52 = vpack.c.bf16 %v240_v51, %v239_v50  ;;  %v1608_v55 = vpack.c.bf16 %v242_v54, %v241_v53  ;;  %v243_v56 = vld [vmem:[%s2318_s3 + $0x80] sm:$0xff]  ;;  %v245_v59 = vld [vmem:[%s2318_s3 + $0x90] sm:$0xff]  ;;  %v246_v60 = vld [vmem:[%s2318_s3 + $0x98] sm:$0xff] }
  0x7c   :  { %v1611_v58 = vpack.c.bf16 %v244_v57, %v243_v56  ;;  %v1614_v61 = vpack.c.bf16 %v246_v60, %v245_v59  ;;  %v330_v62 = vld [vmem:[%s2319_s4 + $0x10] sm:$0xff]  ;;  %v331_v63 = vld [vmem:[%s2319_s4 + $0x18] sm:$0xff]  ;;  %v133_v6 = vld [vmem:[%s2317_s2] sm:$0x3]  ;;  %s1908_s2 = smov 64  }
  0x7d   :  { %v2195_v2 = vpack.c.bf16 %v331_v63, %v330_v62  ;;  %v142_v8 = vrot.slane %v133_v6, %v141_v5  ;;  %v138_v9 = vrot.slane %v133_v6, %v137_v7  ;;  %v1394_v16 = vld [vmem:[#allocation2] ss:$0 sm:$0xff] }
  0x7e   :  { %1585 = vmatpush1.bf16.msra.mxu0 %v1584_v33  ;;  %1594 = vmatpush1.bf16.msra.mxu1 %v1593_v34 }
  0x7f   :  { %1391 = vmatprep.subr.msk.mxu0 %vm149_vm0, %v132_v35  ;;  %1595 = vmatprep.subr.bf16.mxu1 %v1906_v1 }
  0x82   :  { %1392 = vmatpush1.msk.msra.mxu0 %vm149_vm0, %v131_v40  ;;  %1597 = vmatpush1.bf16.msra.mxu1 %v1596_v41 }
  0x83   :  { %1393 = vmatmul.mubr.msk.f32.vlgmr.msra.gmra.mrb[0].mxu0 %vm145_vm1, %v114_v42  ;;  %1598 = vmatprep.subr.bf16.mxu1 %v1906_v1 }
  0x84   :  { %1616 = vmatprep.subr.bf16.mxu0 %v1906_v1  ;;  %1472 = vmatprep.mubr.msk.f32.mxu0 %vm1907_vm2, %v1905_v0 }
  0x85   :  { %1618 = vmatpush3.bf16.msra.mxu0 %v2147_v45 }
  0x86   :  { %1619 = vmatprep.subr.bf16.mxu0 %v1906_v1  ;;  %1600 = vmatpush1.bf16.msra.mxu1 %v1599_v46 }
  0x87   :  { %1601 = vmatprep.subr.bf16.mxu1 %v1906_v1 }
  0x89   :  { %1621 = vmatpush3.bf16.msra.mxu0 %v2195_v2 }
  0x8a   :  { %1603 = vmatpush1.bf16.msra.mxu1 %v1602_v49  ;;  %1622 = vmatprep.subr.bf16.mxu0 %v1906_v1 }
  0x8b   :  { %1604 = vmatprep.subr.bf16.mxu1 %v1906_v1 }
  0x8c   :  { %1473 = vmatmul.mubr.f32.vlgmr.msra.gmra.mrb[2].mxu0 %v1905_v0 }
  0x8d   :  { %1624 = vmatpush3.bf16.msra.mxu0 %v2147_v45  ;;  %1483 = vmatprep.mubr.msk.f32.mxu0 %vm1907_vm2, %v1905_v0 }
  0x8e   :  { %1606 = vmatpush1.bf16.msra.mxu1 %v1605_v52  ;;  %1625 = vmatprep.subr.bf16.mxu0 %v1906_v1 }
  0x8f   :  { %1607 = vmatprep.subr.bf16.mxu1 %v1906_v1 }
  0x91   :  { %1627 = vmatpush3.bf16.msra.mxu0 %v2195_v2 }
  0x92   :  { %1609 = vmatpush1.bf16.msra.mxu1 %v1608_v55  ;;  %1628 = vmatprep.subr.bf16.mxu0 %v1906_v1 }
  0x93   :  { %1610 = vmatprep.subr.bf16.mxu1 %v1906_v1 }
  0x96   :  { %1612 = vmatpush1.bf16.msra.mxu1 %v1611_v58 }
  0x97   :  { %1613 = vmatprep.subr.bf16.mxu1 %v1906_v1 }
  0x9a   :  { %1615 = vmatpush1.bf16.msra.mxu1 %v1614_v61 }
  0x9b   :  { %1634 = vmatprep.subr.bf16.mxu1 %v1906_v1 }
 0x156   :  { %v222_v10 = vpop.f32.mrb[0].mxu0 }
 0x157   :  { %v224_v11 = vpop.f32.mrb[1].mxu0  ;;  %v223_v13 = vadd.f32 %v222_v10, %v138_v9 }
 0x158   :  { %v225_v12 = vadd.f32 %v224_v11, %v142_v8 }
 0x15a   :  { %1395 = vmatprep.mubr.msk.f32.mxu1 %vm254_vm3, %v225_v12 }
 0x15b   :  { %323 = vmatmul.mubr.f32.vlgmr.msra.gmra.mrb[0].mxu1 %v223_v13 }
 0x15c   :  { %1636 = vmatpush3.bf16.msra.mxu1 %v2147_v45  ;;  %1505 = vmatprep.mubr.msk.f32.mxu1 %vm1907_vm2, %v1905_v0 }
 0x15d   :  { %1637 = vmatprep.subr.bf16.mxu1 %v1906_v1 }
 0x15f   :  { %v401_v14 = vpop.f32.mrb[2].mxu0 }
 0x160   :  { %1639 = vmatpush3.bf16.msra.mxu1 %v2195_v2  ;;  %v1474_v15 = vpop.f32.mrb[3].mxu0 }
 0x161   :  { %1646 = vmatprep.subr.bf16.mxu1 %v1906_v1 }
 0x22e   :  { %v324_v17 = vpop.f32.mrb[0].mxu1 }
 0x22f   :  { %v2219_v18 = vadd.f32 %v1394_v16, %v324_v17  ;;  %v326_v19 = vpop.f32.mrb[1].mxu1 }
 0x231   :  { %v405_v20 = vadd.f32 %v401_v14, %v2219_v18 }
 0x233   :  { %1687 = vtanh.f32 %v405_v20  ;;  %v1396_v22 = vmul.f32 -1.442695, %v405_v20 }
 0x235   :  { %1689 = vpow2.f32 %v1396_v22 }
 0x23d   :  { %v1688_v21 = vpop.eup %1687 }
 0x23e   :  { %415 = vrot.lane.b32.xlu0 %v1688_v21, %s1908_s2 }
 0x23f   :  { %v1690_v23 = vpop.eup %1689 }
 0x240   :  { %v409_v24 = vadd.f32 1.0, %v1690_v23 }
 0x242   :  { %1691 = vrcp.f32 %v409_v24 }
 0x24c   :  { %v1692_v25 = vpop.eup %1691 }
 0x24d   :  { %v413_v28 = vmul.f32 0.0, %v1692_v25 }
 0x2b0   :  { %v416_v26 = vpop.permute.xlu0 %415 }
 0x2b1   :  { %v418_v27 = vmul.f32 %v1692_v25, %v416_v26 }
 0x2b3   :  { %420 = vrot.lane.b32.xlu0 %v418_v27, %s1909_s6 }
 0x325   :  { %v421_v29 = vpop.permute.xlu0 %420 }
 0x326   :  { %v423_v30 = vadd.f32 %v421_v29, %v413_v28 }
 0x328   :  { %1693 = vtanh.f32 %v423_v30  ;;  %v517_v47 = vrot.slane %v423_v30, 7 }
 0x332   :  { %v1694_v31 = vpop.eup %1693 }
 0x333   :  { %426 = vrot.lane.b32.xlu1 %v1694_v31, %s1908_s2 }
 0x3a5   :  { %v427_v32 = vpop.permute.xlu1 %426 }
 0x3a6   :  { %v2225_v33 = vmul.f32 %v1692_v25, %v427_v32 }
 0x3a8   :  { %431 = vrot.lane.b32.xlu1 %v2225_v33, %s1909_s6 }
 0x41a   :  { %v432_v34 = vpop.permute.xlu1 %431 }
 0x41b   :  { %1484 = vmatmul.mubr.msk.f32.vlgmr.msra.gmra.mrb[4].mxu0 %vm254_vm3, %v432_v34 }
 0x41c   :  { %1630 = vmatpush3.bf16.msra.mxu0 %v2147_v45  ;;  %1494 = vmatprep.mubr.msk.f32.mxu0 %vm1907_vm2, %v1905_v0 }
 0x41d   :  { %1631 = vmatprep.subr.bf16.mxu0 %v1906_v1 }
 0x420   :  { %1633 = vmatpush3.bf16.msra.mxu0 %v2195_v2 }
 0x421   :  { %1640 = vmatprep.subr.bf16.mxu0 %v1906_v1 }
 0x4ee   :  { %v501_v35 = vpop.f32.mrb[4].mxu0 }
 0x4ef   :  { %v506_v36 = vrot.slane %v501_v35, 7  ;;  %v1485_v37 = vpop.f32.mrb[5].mxu0 }
 0x4f1   :  { %v508_v38 = vadd.f32 %v506_v36, %v2219_v18 }
 0x4f3   :  { %1695 = vtanh.f32 %v508_v38  ;;  %v1398_v40 = vmul.f32 -1.442695, %v508_v38 }
 0x4f5   :  { %1697 = vpow2.f32 %v1398_v40 }
 0x4fd   :  { %v1696_v39 = vpop.eup %1695 }
 0x4fe   :  { %521 = vrot.lane.b32.xlu0 %v1696_v39, %s1908_s2 }
 0x4ff   :  { %v1698_v41 = vpop.eup %1697 }
 0x500   :  { %v512_v42 = vadd.f32 1.0, %v1698_v41 }
 0x502   :  { %1699 = vrcp.f32 %v512_v42 }
 0x50c   :  { %v1700_v43 = vpop.eup %1699 }
 0x50d   :  { %v519_v48 = vmul.f32 %v1700_v43, %v517_v47 }
 0x570   :  { %v522_v44 = vpop.permute.xlu0 %521 }
 0x571   :  { %v524_v46 = vmul.f32 %v1700_v43, %v522_v44 }
 0x573   :  { %526 = vrot.lane.b32.xlu1 %v524_v46, %s1909_s6 }
 0x5e5   :  { %v527_v49 = vpop.permute.xlu1 %526 }
 0x5e6   :  { %v529_v50 = vadd.f32 %v527_v49, %v519_v48 }
 0x5e8   :  { %1701 = vtanh.f32 %v529_v50  ;;  %v624_v6 = vrot.slane %v529_v50, 7 }
 0x5f2   :  { %v1702_v51 = vpop.eup %1701 }
 0x5f3   :  { %532 = vrot.lane.b32.xlu0 %v1702_v51, %s1908_s2 }
 0x665   :  { %v533_v52 = vpop.permute.xlu0 %532 }
 0x666   :  { %v535_v53 = vmul.f32 %v1700_v43, %v533_v52 }
 0x668   :  { %v537_v54 = vrot.slane %v535_v53, 1  ;;  %v1179_v13 = vsel %vm1178_vm4, %v2225_v33, %v535_v53 }
 0x66a   :  { %538 = vrot.lane.b32.xlu1 %v537_v54, %s1909_s6 }
 0x6dc   :  { %v539_v55 = vpop.permute.xlu1 %538 }
 0x6dd   :  { %1495 = vmatmul.mubr.msk.f32.vlgmr.msra.gmra.mrb[6].mxu0 %vm254_vm3, %v539_v55 }
 0x6de   :  { %1642 = vmatpush3.bf16.msra.mxu0 %v2147_v45  ;;  %1516 = vmatprep.mubr.msk.f32.mxu0 %vm1907_vm2, %v1905_v0 }
 0x6df   :  { %1643 = vmatprep.subr.bf16.mxu0 %v1906_v1 }
 0x6e2   :  { %1645 = vmatpush3.bf16.msra.mxu0 %v2195_v2 }
 0x6e3   :  { %1652 = vmatprep.subr.bf16.mxu0 %v1906_v1 }
 0x7b0   :  { %v608_v56 = vpop.f32.mrb[6].mxu0 }
 0x7b1   :  { %v613_v57 = vrot.slane %v608_v56, 6  ;;  %v1496_v58 = vpop.f32.mrb[7].mxu0 }
 0x7b3   :  { %v615_v59 = vadd.f32 %v613_v57, %v2219_v18 }
 0x7b5   :  { %1703 = vtanh.f32 %v615_v59  ;;  %v1400_v61 = vmul.f32 -1.442695, %v615_v59 }
 0x7b7   :  { %1705 = vpow2.f32 %v1400_v61 }
 0x7bf   :  { %v1704_v60 = vpop.eup %1703 }
 0x7c0   :  { %628 = vrot.lane.b32.xlu0 %v1704_v60, %s1908_s2 }
 0x7c1   :  { %v1706_v62 = vpop.eup %1705 }
 0x7c2   :  { %v619_v63 = vadd.f32 1.0, %v1706_v62 }
 0x7c4   :  { %1707 = vrcp.f32 %v619_v63 }
 0x7ce   :  { %v1708_v3 = vpop.eup %1707 }
 0x7cf   :  { %v626_v7 = vmul.f32 %v1708_v3, %v624_v6 }
 0x832   :  { %v629_v4 = vpop.permute.xlu0 %628 }
 0x833   :  { %v631_v5 = vmul.f32 %v1708_v3, %v629_v4 }
 0x835   :  { %633 = vrot.lane.b32.xlu1 %v631_v5, %s1909_s6 }
 0x8a7   :  { %v634_v8 = vpop.permute.xlu1 %633 }
 0x8a8   :  { %v636_v9 = vadd.f32 %v634_v8, %v626_v7 }
 0x8aa   :  { %1709 = vtanh.f32 %v636_v9  ;;  %v731_v29 = vrot.slane %v636_v9, 7 }
 0x8b4   :  { %v1710_v10 = vpop.eup %1709 }
 0x8b5   :  { %639 = vrot.lane.b32.xlu0 %v1710_v10, %s1908_s2 }
 0x927   :  { %v640_v11 = vpop.permute.xlu0 %639 }
 0x928   :  { %v642_v12 = vmul.f32 %v1708_v3, %v640_v11 }
 0x92a   :  { %v644_v14 = vrot.slane %v642_v12, 2  ;;  %v1181_v15 = vsel %vm1180_vm5, %v1179_v13, %v642_v12 }
 0x92c   :  { %645 = vrot.lane.b32.xlu1 %v644_v14, %s1909_s6 }
 0x99e   :  { %v646_v16 = vpop.permute.xlu1 %645 }
 0x99f   :  { %1506 = vmatmul.mubr.msk.f32.vlgmr.msra.gmra.mrb[2].mxu1 %vm254_vm3, %v646_v16 }
 0x9a0   :  { %1648 = vmatpush3.bf16.msra.mxu1 %v2147_v45  ;;  %1527 = vmatprep.mubr.msk.f32.mxu1 %vm1907_vm2, %v1905_v0 }
 0x9a1   :  { %1649 = vmatprep.subr.bf16.mxu1 %v1906_v1 }
 0x9a4   :  { %1651 = vmatpush3.bf16.msra.mxu1 %v2195_v2 }
 0x9a5   :  { %1658 = vmatprep.subr.bf16.mxu1 %v1906_v1 }
 0xa72   :  { %v715_v17 = vpop.f32.mrb[2].mxu1 }
 0xa73   :  { %v720_v19 = vrot.slane %v715_v17, 5  ;;  %v1507_v20 = vpop.f32.mrb[3].mxu1 }
 0xa75   :  { %v722_v21 = vadd.f32 %v720_v19, %v2219_v18 }
 0xa77   :  { %1711 = vtanh.f32 %v722_v21  ;;  %v1402_v23 = vmul.f32 -1.442695, %v722_v21 }
 0xa79   :  { %1713 = vpow2.f32 %v1402_v23 }
 0xa81   :  { %v1712_v22 = vpop.eup %1711 }
 0xa82   :  { %735 = vrot.lane.b32.xlu0 %v1712_v22, %s1908_s2 }
 0xa83   :  { %v1714_v24 = vpop.eup %1713 }
 0xa84   :  { %v726_v25 = vadd.f32 1.0, %v1714_v24 }
 0xa86   :  { %1715 = vrcp.f32 %v726_v25 }
 0xa90   :  { %v1716_v26 = vpop.eup %1715 }
 0xa91   :  { %v733_v30 = vmul.f32 %v1716_v26, %v731_v29 }
 0xaf4   :  { %v736_v27 = vpop.permute.xlu0 %735 }
 0xaf5   :  { %v738_v28 = vmul.f32 %v1716_v26, %v736_v27 }
 0xaf7   :  { %740 = vrot.lane.b32.xlu1 %v738_v28, %s1909_s6 }
 0xb69   :  { %v741_v31 = vpop.permute.xlu1 %740 }
 0xb6a   :  { %v743_v32 = vadd.f32 %v741_v31, %v733_v30 }
 0xb6c   :  { %1717 = vtanh.f32 %v743_v32  ;;  %v838_v51 = vrot.slane %v743_v32, 7 }
 0xb76   :  { %v1718_v33 = vpop.eup %1717 }
 0xb77   :  { %746 = vrot.lane.b32.xlu0 %v1718_v33, %s1908_s2 }
 0xbe9   :  { %v747_v34 = vpop.permute.xlu0 %746 }
 0xbea   :  { %v749_v35 = vmul.f32 %v1716_v26, %v747_v34 }
 0xbec   :  { %v751_v36 = vrot.slane %v749_v35, 3  ;;  %v1183_v37 = vsel %vm1182_vm6, %v1181_v15, %v749_v35 }
 0xbee   :  { %752 = vrot.lane.b32.xlu1 %v751_v36, %s1909_s6 }
 0xc60   :  { %v753_v38 = vpop.permute.xlu1 %752 }
 0xc61   :  { %1517 = vmatmul.mubr.msk.f32.vlgmr.msra.gmra.mrb[8].mxu0 %vm254_vm3, %v753_v38 }
 0xc62   :  { %1654 = vmatpush3.bf16.msra.mxu0 %v2147_v45  ;;  %1538 = vmatprep.mubr.msk.f32.mxu0 %vm1907_vm2, %v1905_v0 }
 0xc63   :  { %1655 = vmatprep.subr.bf16.mxu0 %v1906_v1 }
 0xc66   :  { %1657 = vmatpush3.bf16.msra.mxu0 %v2195_v2 }
 0xc67   :  { %1664 = vmatprep.subr.bf16.mxu0 %v1906_v1 }
 0xd34   :  { %v822_v39 = vpop.f32.mrb[8].mxu0 }
 0xd35   :  { %v827_v40 = vrot.slane %v822_v39, 4  ;;  %v1518_v41 = vpop.f32.mrb[9].mxu0 }
 0xd37   :  { %v829_v42 = vadd.f32 %v827_v40, %v2219_v18 }
 0xd39   :  { %1719 = vtanh.f32 %v829_v42  ;;  %v1404_v44 = vmul.f32 -1.442695, %v829_v42 }
 0xd3b   :  { %1721 = vpow2.f32 %v1404_v44 }
 0xd43   :  { %v1720_v43 = vpop.eup %1719 }
 0xd44   :  { %842 = vrot.lane.b32.xlu0 %v1720_v43, %s1908_s2 }
 0xd45   :  { %v1722_v46 = vpop.eup %1721 }
 0xd46   :  { %v833_v47 = vadd.f32 1.0, %v1722_v46 }
 0xd48   :  { %1723 = vrcp.f32 %v833_v47 }
 0xd52   :  { %v1724_v48 = vpop.eup %1723 }
 0xd53   :  { %v840_v52 = vmul.f32 %v1724_v48, %v838_v51 }
 0xdb6   :  { %v843_v49 = vpop.permute.xlu0 %842 }
 0xdb7   :  { %v845_v50 = vmul.f32 %v1724_v48, %v843_v49 }
 0xdb9   :  { %847 = vrot.lane.b32.xlu1 %v845_v50, %s1909_s6 }
 0xe2b   :  { %v848_v53 = vpop.permute.xlu1 %847 }
 0xe2c   :  { %v850_v54 = vadd.f32 %v848_v53, %v840_v52 }
 0xe2e   :  { %1725 = vtanh.f32 %v850_v54 }
 0xe38   :  { %v1726_v55 = vpop.eup %1725 }
 0xe39   :  { %853 = vrot.lane.b32.xlu0 %v1726_v55, %s1908_s2 }
 0xeab   :  { %v854_v56 = vpop.permute.xlu0 %853 }
 0xeac   :  { %v856_v57 = vmul.f32 %v1724_v48, %v854_v56  ;;  %v1192_v56 = vld [vmem:[#allocation4 + $0x8] sm:$0xff] }
 0xeae   :  { %v858_v58 = vrot.slane %v856_v57, 4  ;;  %v1185_v59 = vsel %vm1184_vm7, %v1183_v37, %v856_v57  ;;  %v1193_v57 = vld [vmem:[#allocation4 + $0x10] sm:$0xff] }
 0xeb0   :  { %859 = vrot.lane.b32.xlu1 %v858_v58, %s1909_s6 }
 0xf22   :  { %v860_v60 = vpop.permute.xlu1 %859 }
 0xf23   :  { %1528 = vmatmul.mubr.msk.f32.vlgmr.msra.gmra.mrb[4].mxu1 %vm254_vm3, %v860_v60 }
 0xf24   :  { %1660 = vmatpush3.bf16.msra.mxu1 %v2147_v45  ;;  %1549 = vmatprep.mubr.msk.f32.mxu1 %vm1907_vm2, %v1905_v0 }
 0xf25   :  { %1661 = vmatprep.subr.bf16.mxu1 %v1906_v1 }
 0xf28   :  { %1663 = vmatpush3.bf16.msra.mxu1 %v2195_v2  ;;  %v945_v2 = vrot.slane %v850_v54, 7 }
 0xf29   :  { %1670 = vmatprep.subr.bf16.mxu1 %v1906_v1 }
 0xff6   :  { %v929_v61 = vpop.f32.mrb[4].mxu1 }
 0xff7   :  { %v934_v62 = vrot.slane %v929_v61, 3  ;;  %v1529_v63 = vpop.f32.mrb[5].mxu1 }
 0xff9   :  { %v936_v3 = vadd.f32 %v934_v62, %v2219_v18 }
 0xffb   :  { %1727 = vtanh.f32 %v936_v3  ;;  %v1406_v5 = vmul.f32 -1.442695, %v936_v3 }
 0xffd   :  { %1729 = vpow2.f32 %v1406_v5  ;;  %v1411_v5 = vld [vmem:[#allocation6] ss:$0 sm:$0xff] }
0x1005   :  { %v1728_v4 = vpop.eup %1727 }
0x1006   :  { %949 = vrot.lane.b32.xlu0 %v1728_v4, %s1908_s2 }
0x1007   :  { %v1730_v45 = vpop.eup %1729 }
0x1008   :  { %v940_v6 = vadd.f32 1.0, %v1730_v45 }
0x100a   :  { %1731 = vrcp.f32 %v940_v6 }
0x1014   :  { %v1732_v7 = vpop.eup %1731 }
0x1015   :  { %v947_v10 = vmul.f32 %v1732_v7, %v945_v2  ;;  %v1289_v2 = vld [vmem:[#allocation7 + $0x8] sm:$0xff] }
0x1078   :  { %v950_v8 = vpop.permute.xlu0 %949 }
0x1079   :  { %v952_v9 = vmul.f32 %v1732_v7, %v950_v8 }
0x107b   :  { %954 = vrot.lane.b32.xlu1 %v952_v9, %s1909_s6 }
0x10ed   :  { %v955_v11 = vpop.permute.xlu1 %954 }
0x10ee   :  { %v957_v12 = vadd.f32 %v955_v11, %v947_v10 }
0x10f0   :  { %1733 = vtanh.f32 %v957_v12  ;;  %v1052_v31 = vrot.slane %v957_v12, 7 }
0x10fa   :  { %v1734_v13 = vpop.eup %1733 }
0x10fb   :  { %960 = vrot.lane.b32.xlu0 %v1734_v13, %s1908_s2  ;;  %v1278_v13 = vld [vmem:[#allocation10] sm:$0xff] }
0x116d   :  { %v961_v14 = vpop.permute.xlu0 %960 }
0x116e   :  { %v963_v15 = vmul.f32 %v1732_v7, %v961_v14 }
0x1170   :  { %v965_v16 = vrot.slane %v963_v15, 5  ;;  %v1187_v17 = vsel %vm1186_vm8, %v1185_v59, %v963_v15  ;;  %v1194_v59 = vld [vmem:[#allocation4 + $0x18] sm:$0xff] }
0x1171   :  { %v1668_v60 = vpack.c.bf16 %v1194_v59, %v1193_v57 }
0x1172   :  { %966 = vrot.lane.b32.xlu1 %v965_v16, %s1909_s6 }
0x11e4   :  { %v967_v19 = vpop.permute.xlu1 %966 }
0x11e5   :  { %1539 = vmatmul.mubr.msk.f32.vlgmr.msra.gmra.mrb[10].mxu0 %vm254_vm3, %v967_v19 }
0x11e6   :  { %1560 = vmatprep.mubr.msk.f32.mxu0 %vm1907_vm2, %v1905_v0 }
0x12b8   :  { %v1036_v20 = vpop.f32.mrb[10].mxu0 }
0x12b9   :  { %v1041_v21 = vrot.slane %v1036_v20, 2  ;;  %v1540_v22 = vpop.f32.mrb[11].mxu0 }
0x12bb   :  { %v1043_v23 = vadd.f32 %v1041_v21, %v2219_v18 }
0x12bd   :  { %1735 = vtanh.f32 %v1043_v23  ;;  %v1408_v25 = vmul.f32 -1.442695, %v1043_v23 }
0x12bf   :  { %1737 = vpow2.f32 %v1408_v25 }
0x12c7   :  { %v1736_v24 = vpop.eup %1735 }
0x12c8   :  { %1056 = vrot.lane.b32.xlu0 %v1736_v24, %s1908_s2 }
0x12c9   :  { %v1738_v26 = vpop.eup %1737 }
0x12ca   :  { %v1047_v27 = vadd.f32 1.0, %v1738_v26 }
0x12cc   :  { %1739 = vrcp.f32 %v1047_v27 }
0x12d6   :  { %v1740_v28 = vpop.eup %1739 }
0x12d7   :  { %v1054_v32 = vmul.f32 %v1740_v28, %v1052_v31 }
0x133a   :  { %v1057_v29 = vpop.permute.xlu0 %1056 }
0x133b   :  { %v1059_v30 = vmul.f32 %v1740_v28, %v1057_v29 }
0x133d   :  { %1061 = vrot.lane.b32.xlu1 %v1059_v30, %s1909_s6 }
0x13af   :  { %v1062_v33 = vpop.permute.xlu1 %1061 }
0x13b0   :  { %v1064_v34 = vadd.f32 %v1062_v33, %v1054_v32 }
0x13b2   :  { %1741 = vtanh.f32 %v1064_v34 }
0x13bc   :  { %v1742_v35 = vpop.eup %1741 }
0x13bd   :  { %1067 = vrot.lane.b32.xlu0 %v1742_v35, %s1908_s2 }
0x142f   :  { %v1068_v36 = vpop.permute.xlu0 %1067 }
0x1430   :  { %v1070_v37 = vmul.f32 %v1740_v28, %v1068_v36 }
0x1432   :  { %v1072_v38 = vrot.slane %v1070_v37, 6  ;;  %v1188_v39 = vsel %vm149_vm0, %v1187_v17, %v1070_v37  ;;  %v1413_v17 = vld [vmem:[#allocation9] ss:$0 sm:$0xff] }
0x1434   :  { %1073 = vrot.lane.b32.xlu1 %v1072_v38, %s1909_s6 }
0x14a6   :  { %v1074_v40 = vpop.permute.xlu1 %1073 }
0x14a7   :  { %1550 = vmatmul.mubr.msk.f32.vlgmr.msra.gmra.mrb[6].mxu1 %vm254_vm3, %v1074_v40 }
0x14a8   :  { %1567 = vmatprep.mubr.msk.f32.mxu1 %vm1907_vm2, %v1905_v0  ;;  %v1159_v0 = vrot.slane %v1064_v34, 7 }
0x157a   :  { %v1143_v41 = vpop.f32.mrb[6].mxu1 }
0x157b   :  { %v1148_v42 = vrot.slane %v1143_v41, 1  ;;  %v1551_v43 = vpop.f32.mrb[7].mxu1 }
0x157d   :  { %v1150_v44 = vadd.f32 %v1148_v42, %v2219_v18  ;;  %v1191_v18 = vld [vmem:[#allocation4] sm:$0xff] }
0x157e   :  { %v1665_v58 = vpack.c.bf16 %v1192_v56, %v1191_v18 }
0x157f   :  { %1743 = vtanh.f32 %v1150_v44  ;;  %v1410_v47 = vmul.f32 -1.442695, %v1150_v44 }
0x1580   :  { %1666 = vmatpush3.bf16.msra.mxu0 %v1665_v58 }
0x1581   :  { %1745 = vpow2.f32 %v1410_v47  ;;  %1667 = vmatprep.subr.bf16.mxu0 %v1906_v1  ;;  %v1288_v1 = vld [vmem:[#allocation7] sm:$0xff] }
0x1582   :  { %v1671_v10 = vpack.c.bf16 %v1289_v2, %v1288_v1 }
0x1584   :  { %1669 = vmatpush3.bf16.msra.mxu0 %v1668_v60  ;;  %1672 = vmatpush3.bf16.msra.mxu1 %v1671_v10 }
0x1589   :  { %v1744_v46 = vpop.eup %1743 }
0x158a   :  { %1163 = vrot.lane.b32.xlu0 %v1744_v46, %s1908_s2 }
0x158b   :  { %v1746_v48 = vpop.eup %1745 }
0x158c   :  { %v1154_v49 = vadd.f32 1.0, %v1746_v48 }
0x158e   :  { %1747 = vrcp.f32 %v1154_v49 }
0x1598   :  { %v1748_v50 = vpop.eup %1747 }
0x1599   :  { %v1161_v53 = vmul.f32 %v1748_v50, %v1159_v0 }
0x15fc   :  { %v1164_v51 = vpop.permute.xlu0 %1163 }
0x15fd   :  { %v1166_v52 = vmul.f32 %v1748_v50, %v1164_v51 }
0x15ff   :  { %1168 = vrot.lane.b32.xlu1 %v1166_v52, %s1909_s6 }
0x1671   :  { %v1169_v54 = vpop.permute.xlu1 %1168 }
0x1672   :  { %v1171_v55 = vadd.f32 %v1169_v54, %v1161_v53 }
0x1674   :  { %1749 = vtanh.f32 %v1171_v55 }
0x167e   :  { %v1750_v61 = vpop.eup %1749 }
0x167f   :  { %1174 = vrot.lane.b32.xlu0 %v1750_v61, %s1908_s2 }
0x16f1   :  { %v1175_v62 = vpop.permute.xlu0 %1174 }
0x16f2   :  { %v1177_v63 = vmul.f32 %v1748_v50, %v1175_v62 }
0x16f4   :  { %v1190_v3 = vsel %vm1189_vm9, %v1188_v39, %v1177_v63 }
0x16f5   :  { %1203 = vrot.lane.b32.xlu1 %v1190_v3, %s1909_s6 }
0x1767   :  { %v1204_v4 = vpop.permute.xlu1 %1203 }
0x1768   :  { %1561 = vmatmul.mubr.msk.f32.vlgmr.msra.gmra.mrb[12].mxu0 %vm254_vm3, %v1204_v4 }
0x183b   :  { %v1273_v45 = vpop.f32.mrb[12].mxu0 }
0x183c   :  { %v1274_v6 = vadd.f32 %v1411_v5, %v1273_v45  ;;  %v1562_v7 = vpop.f32.mrb[13].mxu0 }
0x183e   :  { %v1277_v8 = vmax.f32 %v1274_v6, 0.0 }
0x1840   :  { %v1279_v9 = vmul.f32 0.5, %v1277_v8  ;;  %1378 = vst [vmem:[%s2327_s12] sm:$0xff] %v1277_v8 }
0x1842   :  { %v1280_v11 = vmul.f32 1.442695, %v1279_v9 }
0x1844   :  { %1751 = vpow2.f32 %v1280_v11 }
0x184e   :  { %v1752_v12 = vpop.eup %1751 }
0x184f   :  { %1283 = vrot.lane.b32.xlu0 %v1752_v12, %s1910_s1 }
0x18c1   :  { %v1284_v14 = vpop.permute.xlu0 %1283 }
0x18c2   :  { %v1286_v15 = vmul.f32 %v1284_v14, %v1278_v13 }
0x18c4   :  { %v1287_v16 = vadd.f32 %v1286_v15, %v1277_v8 }
0x18c6   :  { %1568 = vmatmul.mubr.msk.f32.vlgmr.msra.gmra.mrb[8].mxu1 %vm1297_vm10, %v1287_v16 }
0x1999   :  { %v1367_v19 = vpop.f32.mrb[8].mxu1 }
0x199a   :  { %v1368_v20 = vadd.f32 %v1413_v17, %v1367_v19  ;;  %v1569_v21 = vpop.f32.mrb[9].mxu1 }
0x199c   :  { %v1415_v22 = vmul.f32 -1.442695, %v1368_v20 }
0x199e   :  { %1753 = vpow2.f32 %v1415_v22 }
0x19a8   :  { %v1754_v23 = vpop.eup %1753 }
0x19a9   :  { %v1374_v24 = vadd.f32 1.0, %v1754_v23 }
0x19ab   :  { %1755 = vrcp.f32 %v1374_v24 }
0x19b5   :  { %v1756_v25 = vpop.eup %1755 }
0x19b6   :  { %1377 = vst [vmem:[%s2326_s11] sm:$0xff] %v1756_v25 }
0x19b7   :  { %1387 = vsyncpa [#allocation3], 1 }
0x19b8   :  { %1388 = vsyncpa [#allocation5], 1 }
0x19b9   :  { %1389 = vsyncpa [#allocation8], 1 }
0x19ba   :  { %1390 = vsyncpa [#allocation11], 1 }

</bundles_post_ra>
